<compile_context>
chip_gen: v7x
topology: tpu7x:2x2x1
jax: 0.10.0
libtpu: 0.0.40
codegen_flags: <defaults>
</compile_context>

<pallas_src>
import math

import jax
import jax.numpy as jnp
from jax import lax
from jax.experimental import pallas as pl
from jax.experimental.pallas import tpu as pltpu

_TB_MAX = 32768  # max batch rows per grid step (keeps double-buffered tiles small)


def _linear_kernel(x_ref, w_ref, b_ref, o_ref):
    # x_ref: (Mb, F*D) folded x rows (VMEM, streamed)
    # w_ref: (F, F*D) block-diagonal weights (VMEM, resident)
    # b_ref: (1,)     bias scalar (SMEM)
    # o_ref: (Mb, F)  outputs; o[m, f] = y[global_row = (step*Mb + m)*F + f]
    o_ref[...] = lax.dot_general(
        x_ref[...],
        w_ref[...],
        dimension_numbers=(((1,), (1,)), ((), ())),  # x_folded @ W_seg^T
        preferred_element_type=jnp.float32,
    ) + b_ref[0]


def _round_up(a, m):
    return -(-a // m) * m


def linear_regression_forward(x, weight, bias, *, tb=None):
    """x: (B, D), weight: (1, D) (PyTorch nn.Linear layout), bias: (1,)."""
    B, D = x.shape
    x = x.astype(jnp.float32)
    w = weight.astype(jnp.float32).reshape(D)
    b = bias.astype(jnp.float32).reshape(1)

    # Fold factor F: F*D is the lane width of one folded row (kept 128-aligned so
    # x tiles are vreg/DMA dense); F is also the output tile's lane width.
    g = math.gcd(D, 128)
    f0 = 128 // g
    F = (8 * f0) // math.gcd(8, f0)          # lcm(8, 128/gcd(D,128))
    # Widen F (denser output stores / longer output DMA rows) while the resident
    # block-diagonal weight stays small (single-ish MXU weight tile territory).
    while F < 32 and (2 * F) * (2 * F) * D * 4 <= (2 << 20):
        F *= 2
    L = F * D
    grain = 8 * F                             # tb granularity (Mb multiple of 8)

    if tb is None:
        tb = _TB_MAX
        # Keep double-buffered x tiles comfortably inside scoped VMEM on every
        # generation (v7x has only 64 MiB/TC physical).
        while tb > grain and 2 * tb * D * 4 > 16 * 1024 * 1024:
            tb //= 2
        # Give the "parallel" grid at least 2 steps for medium B (v7x: 2 TCs).
        tb = min(tb, _round_up(-(-B // 2), grain))
    tb = max(grain, _round_up(tb, grain))

    # Zero-pad the ragged tail (padded rows produce `bias` and are sliced off).
    b_padded = pl.cdiv(B, tb) * tb
    if b_padded != B:
        x = jnp.pad(x, ((0, b_padded - B), (0, 0)))

    x_folded = x.reshape(b_padded // F, L)    # free, contiguous view
    # Block-diagonal weights: W_seg[f, f*D + d] = w[d]
    w_seg = (jnp.eye(F, dtype=jnp.float32)[:, :, None] * w.reshape(1, 1, D)).reshape(F, L)

    Mb = tb // F
    n_steps = b_padded // tb

    # Scoped-VMEM limit from *padded* double-buffered footprints (review item).
    x_bytes = Mb * L * 4
    out_bytes = Mb * max(F, 128) * 4          # output lane dim pads to 128 in VMEM
    w_bytes = F * L * 4
    needed = 2 * (x_bytes + out_bytes + w_bytes)
    vmem_limit = int(min(max(needed + 4 * 2**20, 32 * 2**20), 56 * 2**20))

    out = pl.pallas_call(
        _linear_kernel,
        out_shape=jax.ShapeDtypeStruct((b_padded // F, F), jnp.float32),
        grid_spec=pltpu.PrefetchScalarGridSpec(
            num_scalar_prefetch=0,
            grid=(n_steps,),
            in_specs=[
                pl.BlockSpec((Mb, L), lambda i: (i, 0)),            # streamed folded x
                pl.BlockSpec((F, L), lambda i: (0, 0)),             # resident weights
                pl.BlockSpec(memory_space=pltpu.MemorySpace.SMEM),  # scalar bias
            ],
            out_specs=pl.BlockSpec((Mb, F), lambda i: (i, 0)),
        ),
        compiler_params=pltpu.CompilerParams(
            dimension_semantics=("parallel",),   # lets v7x shard steps over 2 TCs
            vmem_limit_bytes=vmem_limit,
        ),
        cost_estimate=pl.CostEstimate(
            flops=2 * B * D,
            transcendentals=0,
            bytes_accessed=B * D * 4 + B * 4 + F * L * 4,
        ),
    )(x_folded, w_seg, b)

    # out[I, f] == y[I*F + f]  ->  row-major reshape is exactly y.
    return out.reshape(b_padded, 1)[:B]


if __name__ == "__main__":
    key = jax.random.PRNGKey(0)
    kx, kw, kb, kx2 = jax.random.split(key, 4)

    batch, input_dim = 8, 32
    x = jax.random.normal(kx, (batch, input_dim), dtype=jnp.float32)

    # Deterministic parameter init (mimics nn.Linear(input_dim, 1) shapes).
    bound = 1.0 / math.sqrt(input_dim)
    weight = jax.random.uniform(kw, (1, input_dim), minval=-bound, maxval=bound,
                                dtype=jnp.float32)
    bias = jax.random.uniform(kb, (1,), minval=-bound, maxval=bound,
                              dtype=jnp.float32)

    # Small case (single grid step).
    out = jax.block_until_ready(linear_regression_forward(x, weight, bias))
    ref = jnp.dot(x, weight.T, precision=jax.lax.Precision.HIGHEST) + bias
    assert out.shape == (batch, 1)
    # f32 kernel (MXU) vs high-precision f32 reference; module itself is f64.
    assert jnp.allclose(out, ref, atol=1e-3, rtol=1e-3), "mismatch vs reference (small)"

    # Larger case: multi-step pipelined grid + ragged-tile padding, both with the
    # auto-picked tile and with a forced small tile (more grid steps).
    big_batch = 5000
    x2 = jax.random.normal(kx2, (big_batch, input_dim), dtype=jnp.float32)
    ref2 = jnp.dot(x2, weight.T, precision=jax.lax.Precision.HIGHEST) + bias
    out2 = jax.block_until_ready(linear_regression_forward(x2, weight, bias))
    out3 = jax.block_until_ready(linear_regression_forward(x2, weight, bias, tb=1024))
    assert out2.shape == (big_batch, 1) and out3.shape == (big_batch, 1)
    assert jnp.allclose(out2, ref2, atol=1e-3, rtol=1e-3), "mismatch vs reference (auto tile)"
    assert jnp.allclose(out3, ref2, atol=1e-3, rtol=1e-3), "mismatch vs reference (tb=1024)"

    print("KERNEL_OK")
</pallas_src>

<mosaic_0001>
module attributes {stable_mosaic.version = 11 : i64} {
  func.func @_linear_kernel(%arg0: i32, %arg1: memref<8x1024xf32, #tpu.memory_space<vmem>>, %arg2: memref<32x1024xf32, #tpu.memory_space<vmem>>, %arg3: memref<1xf32, #tpu.memory_space<smem>>, %arg4: memref<8x32xf32, #tpu.memory_space<vmem>>) attributes {dimension_semantics = [#tpu.dimension_semantics<parallel>], iteration_bounds = array<i64: 1>, scalar_prefetch = 0 : i64, scratch_operands = 0 : i64, tpu.core_type = #tpu.core_type<tc>, window_params = [{transform_indices = @transform_0, window_bounds = array<i64: 8, 1024>}, {pipeline_mode = #tpu.pipeline_mode<synchronous>, transform_indices = @transform_1, window_bounds = array<i64: 32, 1024>}, {transform_indices = @transform_2, window_bounds = array<i64: 1>}, {transform_indices = @transform_3, window_bounds = array<i64: 8, 32>}]} {
    %c0 = arith.constant 0 : index
    %c0_0 = arith.constant 0 : index
    %0 = vector.load %arg1[%c0, %c0_0] : memref<8x1024xf32, #tpu.memory_space<vmem>>, vector<8x1024xf32>
    %c0_1 = arith.constant 0 : index
    %c0_2 = arith.constant 0 : index
    %1 = vector.load %arg2[%c0_1, %c0_2] : memref<32x1024xf32, #tpu.memory_space<vmem>>, vector<32x1024xf32>
    %cst = arith.constant dense<0.000000e+00> : vector<8x32xf32>
    %2 = tpu.matmul %0, %1, %cst {dimension_numbers = #tpu.dot_dimension_numbers<[1], [1], [0], [0], [0, 0, 1, 0], [], []>} : vector<8x1024xf32>, vector<32x1024xf32>, vector<8x32xf32> -> vector<8x32xf32>
    %c0_3 = arith.constant 0 : index
    %3 = memref.load %arg3[%c0_3] : memref<1xf32, #tpu.memory_space<smem>>
    %4 = vector.broadcast %3 : f32 to vector<8x32xf32>
    %5 = arith.addf %2, %4 : vector<8x32xf32>
    %c0_4 = arith.constant 0 : index
    %c0_5 = arith.constant 0 : index
    %6 = vector.load %arg4[%c0_4, %c0_5] : memref<8x32xf32, #tpu.memory_space<vmem>>, vector<8x32xf32>
    tpu.vector_store %arg4[%c0_4, %c0_5], %5 {strides = array<i32>} : memref<8x32xf32, #tpu.memory_space<vmem>>, vector<8x32xf32>,
    return
  }
  func.func @transform_0(%arg0: i32) -> (i32, i32) {
    %c0_i32 = arith.constant 0 : i32
    %c0_i32_0 = arith.constant 0 : i32
    return %arg0, %c0_i32 : i32, i32
  }
  func.func @transform_1(%arg0: i32) -> (i32, i32) {
    %c0_i32 = arith.constant 0 : i32
    %c0_i32_0 = arith.constant 0 : i32
    %c0_i32_1 = arith.constant 0 : i32
    return %c0_i32, %c0_i32_0 : i32, i32
  }
  func.func @transform_2(%arg0: i32) -> i32 {
    %c0_i32 = arith.constant 0 : i32
    %c0_i32_0 = arith.constant 0 : i32
    return %c0_i32 : i32
  }
  func.func @transform_3(%arg0: i32) -> (i32, i32) {
    %c0_i32 = arith.constant 0 : i32
    %c0_i32_0 = arith.constant 0 : i32
    return %arg0, %c0_i32 : i32, i32
  }
}

</mosaic_0001>

<bundles_post_ra>
// kernel: tpu_custom_call.1
= control target key start
LH: loop header
LB: loop body
LE: loop exit
PB: predicated region body
PF: predicated region fallthrough
CT: control target
= control target key end

     0   :  { %9 = vsyncpa [#allocation4], 0  ;;  %s568_s0 = inlined_call_operand.hbm [shape: f32[8,1024], index: 0, kind: input, shape index: {}]   ;;  %s569_s1 = inlined_call_operand.hbm [shape: f32[32,1024], index: 1, kind: input, shape index: {}]   ;;  %s570_s2 = inlined_call_operand.<no memory space> [shape: f32[1], index: 2, kind: input, shape index: {}]   ;;  %s571_s3 = inlined_call_operand.hbm [shape: f32[8,32], index: 3, kind: output, shape index: {}]  }
   0x1   :  { %10 = vsyncpa [#allocation7], 0 }
   0x2   :  { %11 = vsyncpa [#allocation5], 0  ;;  %s497_s12 = smov [#allocation3]   ;;  %s498_s14 = smov [#allocation6]  }
   0x3   :  { %s18_s13 = sshll.u32 %s497_s12, 4  ;;  %s27_s15 = sshll.u32 %s498_s14, 4  ;;  %s19_s13 = int_to_ptr.vmem [resolvable:$true] %s18_s13  ;;  %s522_s15 = int_to_ptr.vmem [resolvable:$true] %s27_s15 }
   0x4   :  { %s425_s18 = scalar_lea.hbm %s568_s0, 1024 }
   0x5   :  { %p426_p0 = scmp.ne.s32.totalorder %s568_s0, %s425_s18  ;;  %p429_p1 = scmp.lt.u32.totalorder %s425_s18, %s568_s0 }
   0x7   :  { %p431_p2 = pnand %p429_p1, %p426_p0 }
   0x9   :  { %434 = shalt.err (!%p431_p2)
}
   0xa   :  { %s435_s23 = scalar_lea.vmem %s19_s13, 1024  ;;  %p440_p4 = scmp.lt.s32.totalorder %s19_s13, %s19_s13 }
   0xb   :  { %p436_p3 = scmp.ne.s32.totalorder %s19_s13, %s435_s23  ;;  %p441_p5 = scmp.lt.s32.totalorder %s435_s23, %s435_s23 }
   0xd   :  { %p442_p6 = por %p441_p5, %p440_p4 }
   0xf   :  { %p443_p7 = pnand %p442_p6, %p436_p3 }
  0x11   :  { %446 = shalt.err (!%p443_p7)
}
  0x12   :  { %21 = dma.hbm_to_vmem [thread:$0]  %s568_s0, 1024, %s19_s13, [#allocation4]  }
  0x13   :  { %s447_s28 = scalar_lea.hbm %s569_s1, 4096 }
  0x14   :  { %p448_p8 = scmp.ne.s32.totalorder %s569_s1, %s447_s28  ;;  %p451_p9 = scmp.lt.u32.totalorder %s447_s28, %s569_s1 }
  0x16   :  { %p453_p10 = pnand %p451_p9, %p448_p8 }
  0x18   :  { %456 = shalt.err (!%p453_p10)
}
  0x19   :  { %s457_s6 = scalar_lea.vmem %s522_s15, 4096  ;;  %p462_p12 = scmp.lt.s32.totalorder %s522_s15, %s522_s15 }
  0x1a   :  { %p458_p11 = scmp.ne.s32.totalorder %s522_s15, %s457_s6  ;;  %p463_p13 = scmp.lt.s32.totalorder %s457_s6, %s457_s6 }
  0x1c   :  { %p464_p0 = por %p463_p13, %p462_p12 }
  0x1e   :  { %p465_p1 = pnand %p464_p0, %p458_p11 }
  0x20   :  { %468 = shalt.err (!%p465_p1)
}
  0x21   :  { %s499_s0 = smov 1024   ;;  %s500_s7 = smov 64  }
  0x22   :  { %33 = dma.hbm_to_vmem [thread:$0]  %s569_s1, 4096, %s522_s15, [#allocation7], %s499_s0, %s499_s0, %s500_s7  }
  0x23   :  { %491 = dma.done.wait [#allocation4], 1024  }
  0x24   :  { %492 = vsyncadd [#allocation4], 4294966272 }
  0x25   :  { %493 = dma.done.wait [#allocation7], 4096  }
  0x26   :  { %494 = vsyncadd [#allocation7], 4294963200  ;;  %v51_v0 = vld [vmem:[#allocation6 + $0x8] sm:$0xff]  ;;  %v50_v5 = vld [vmem:[#allocation6] sm:$0xff]  ;;  %v83_v56 = vstv %s570_s2  ;;  %s501_s11 = smov [#allocation8]   ;;  %vm364_vm0 = vcmask 261120  }
  0x27   :  { %v59_v1 = vld [vmem:[#allocation6 + $0x48] sm:$0xff]  ;;  %v58_v6 = vld [vmem:[#allocation6 + $0x40] sm:$0xff]  ;;  %v53_v23 = vld [vmem:[#allocation6 + $0x18] sm:$0xff]  ;;  %s372_s12 = sshll.u32 %s501_s11, 4  ;;  %s373_s12 = int_to_ptr.vmem [resolvable:$true] %s372_s12 }
  0x28   :  { %v55_v2 = vld [vmem:[#allocation6 + $0x28] sm:$0xff]  ;;  %v382_v3 = vpack.c.bf16 %v59_v1, %v51_v0  ;;  %v384_v8 = vpack.c.bf16 %v58_v6, %v50_v5  ;;  %v54_v9 = vld [vmem:[#allocation6 + $0x20] sm:$0xff]  ;;  %v61_v24 = vld [vmem:[#allocation6 + $0x58] sm:$0xff]  ;;  %s469_s13 = scalar_lea.vmem %s373_s12, 128  ;;  %p474_p3 = scmp.lt.s32.totalorder %s373_s12, %s373_s12 }
  0x29   :  { %v63_v4 = vld [vmem:[#allocation6 + $0x68] sm:$0xff]  ;;  %v62_v10 = vld [vmem:[#allocation6 + $0x60] sm:$0xff]  ;;  %v57_v26 = vld [vmem:[#allocation6 + $0x38] sm:$0xff]  ;;  %v390_v30 = vpack.c.bf16 %v61_v24, %v53_v23  ;;  %p470_p2 = scmp.ne.s32.totalorder %s373_s12, %s469_s13  ;;  %p475_p4 = scmp.lt.s32.totalorder %s469_s13, %s469_s13 }
  0x2a   :  { %v398_v7 = vpack.c.bf16 %v63_v4, %v55_v2  ;;  %v67_v11 = vld [vmem:[#allocation6 + $0x88] sm:$0xff]  ;;  %383 = vmatprep.subr.bf16.mxu1 %v382_v3  ;;  %v400_v12 = vpack.c.bf16 %v62_v10, %v54_v9  ;;  %v66_v18 = vld [vmem:[#allocation6 + $0x80] sm:$0xff]  ;;  %v65_v27 = vld [vmem:[#allocation6 + $0x78] sm:$0xff] }
  0x2b   :  { %v75_v13 = vld [vmem:[#allocation6 + $0xc8] sm:$0xff]  ;;  %385 = vmatpush1.bf16.xpose.msra.mxu1 %v384_v8  ;;  %v74_v19 = vld [vmem:[#allocation6 + $0xc0] sm:$0xff]  ;;  %v406_v31 = vpack.c.bf16 %v65_v27, %v57_v26  ;;  %v52_v32 = vld [vmem:[#allocation6 + $0x10] sm:$0xff]  ;;  %p476_p5 = por %p475_p4, %p474_p3 }
  0x2c   :  { %v71_v14 = vld [vmem:[#allocation6 + $0xa8] sm:$0xff]  ;;  %399 = vmatprep.subr.bf16.mxu0 %v398_v7  ;;  %v386_v16 = vpack.c.bf16 %v75_v13, %v67_v11  ;;  %v70_v20 = vld [vmem:[#allocation6 + $0xa0] sm:$0xff]  ;;  %v388_v28 = vpack.c.bf16 %v74_v19, %v66_v18  ;;  %v60_v33 = vld [vmem:[#allocation6 + $0x50] sm:$0xff] }
  0x2d   :  { %v79_v15 = vld [vmem:[#allocation6 + $0xe8] sm:$0xff]  ;;  %401 = vmatpush1.bf16.xpose.msra.mxu0 %v400_v12  ;;  %v78_v21 = vld [vmem:[#allocation6 + $0xe0] sm:$0xff]  ;;  %v56_v34 = vld [vmem:[#allocation6 + $0x30] sm:$0xff]  ;;  %v392_v41 = vpack.c.bf16 %v60_v33, %v52_v32  ;;  %p477_p6 = pnand %p476_p5, %p470_p2 }
  0x2e   :  { %v402_v17 = vpack.c.bf16 %v79_v15, %v71_v14  ;;  %v43_v22 = vld [vmem:[#allocation3 + $0x8] sm:$0xff]  ;;  %387 = vmatprep.subr.bf16.mxu1 %v386_v16  ;;  %v404_v29 = vpack.c.bf16 %v78_v21, %v70_v20  ;;  %v64_v35 = vld [vmem:[#allocation6 + $0x70] sm:$0xff]  ;;  %v69_v36 = vld [vmem:[#allocation6 + $0x98] sm:$0xff] }
  0x2f   :  { %v47_v25 = vld [vmem:[#allocation3 + $0x28] sm:$0xff]  ;;  %148 = vmatprep.mubr.f32.mxu1 %v43_v22  ;;  %v77_v37 = vld [vmem:[#allocation6 + $0xd8] sm:$0xff]  ;;  %v42_v40 = vld [vmem:[#allocation3] sm:$0xff]  ;;  %v408_v43 = vpack.c.bf16 %v64_v35, %v56_v34 }
  0x30   :  { %403 = vmatprep.subr.bf16.mxu0 %v402_v17  ;;  %288 = vmatprep.mubr.f32.mxu0 %v47_v25  ;;  %v73_v38 = vld [vmem:[#allocation6 + $0xb8] sm:$0xff]  ;;  %v46_v42 = vld [vmem:[#allocation3 + $0x20] sm:$0xff]  ;;  %v394_v44 = vpack.c.bf16 %v77_v37, %v69_v36  ;;  %v68_v48 = vld [vmem:[#allocation6 + $0x90] sm:$0xff] }
  0x31   :  { %v81_v39 = vld [vmem:[#allocation6 + $0xf8] sm:$0xff]  ;;  %v76_v49 = vld [vmem:[#allocation6 + $0xd0] sm:$0xff] }
  0x32   :  { %v410_v45 = vpack.c.bf16 %v81_v39, %v73_v38  ;;  %v45_v46 = vld [vmem:[#allocation3 + $0x18] sm:$0xff]  ;;  %v72_v50 = vld [vmem:[#allocation6 + $0xb0] sm:$0xff]  ;;  %v396_v52 = vpack.c.bf16 %v76_v49, %v68_v48 }
  0x33   :  { %389 = vmatpush1.bf16.xpose.msra.mxu1 %v388_v28  ;;  %v49_v47 = vld [vmem:[#allocation3 + $0x38] sm:$0xff]  ;;  %v80_v51 = vld [vmem:[#allocation6 + $0xf0] sm:$0xff] }
  0x34   :  { %391 = vmatprep.subr.bf16.mxu1 %v390_v30  ;;  %v412_v53 = vpack.c.bf16 %v80_v51, %v72_v50  ;;  %v44_v54 = vld [vmem:[#allocation3 + $0x10] sm:$0xff] }
  0x35   :  { %405 = vmatpush1.bf16.xpose.msra.mxu0 %v404_v29  ;;  %v48_v55 = vld [vmem:[#allocation3 + $0x30] sm:$0xff] }
  0x36   :  { %407 = vmatprep.subr.bf16.mxu0 %v406_v31 }
  0x3a   :  { %149 = vmatmul.mubr.f32.vlgmr.msra.gmra.mrb[0].mxu1 %v42_v40 }
  0x3b   :  { %393 = vmatpush1.bf16.xpose.msra.mxu1 %v392_v41  ;;  %218 = vmatprep.mubr.f32.mxu1 %v45_v46 }
  0x3c   :  { %289 = vmatmul.mubr.f32.vlgmr.msra.gmra.mrb[0].mxu0 %v46_v42  ;;  %395 = vmatprep.subr.bf16.mxu1 %v394_v44 }
  0x3d   :  { %409 = vmatpush1.bf16.xpose.msra.mxu0 %v408_v43  ;;  %358 = vmatprep.mubr.f32.mxu0 %v49_v47 }
  0x3e   :  { %411 = vmatprep.subr.bf16.mxu0 %v410_v45 }
  0x43   :  { %397 = vmatpush1.bf16.xpose.msra.mxu1 %v396_v52 }
  0x45   :  { %413 = vmatpush1.bf16.xpose.msra.mxu0 %v412_v53 }
  0x4a   :  { %219 = vmatmul.mubr.f32.vlgmr.msra.gmra.mrb[0].mxu1 %v44_v54 }
  0x4c   :  { %359 = vmatmul.mubr.f32.vlgmr.msra.gmra.mrb[0].mxu0 %v48_v55 }
 0x11d   :  { %v220_v57 = vpop.f32.mrb[0].mxu1 }
 0x11e   :  { %v414_v58 = vadd.f32 %v220_v57, %v83_v56  ;;  %v222_v60 = vpop.f32.mrb[1].mxu1 }
 0x11f   :  { %v360_v59 = vpop.f32.mrb[0].mxu0 }
 0x120   :  { %v362_v61 = vpop.f32.mrb[1].mxu0  ;;  %v415_v62 = vadd.f32 %v414_v58, %v360_v59 }
 0x122   :  { %365 = vst.msk [vmem:[#allocation8] sm:$0xff] %vm364_vm0, %v415_v62 }
 0x123   :  { %480 = shalt.err (!%p477_p6)
}
 0x124   :  { %s481_s15 = scalar_lea.hbm %s571_s3, 128 }
 0x125   :  { %p482_p7 = scmp.ne.s32.totalorder %s571_s3, %s481_s15  ;;  %p485_p8 = scmp.lt.u32.totalorder %s481_s15, %s571_s3 }
 0x127   :  { %p487_p9 = pnand %p485_p8, %p482_p7 }
 0x129   :  { %490 = shalt.err (!%p487_p9)
}
 0x12a   :  { %375 = dma.vmem_to_hbm [thread:$0]  %s373_s12, 128, %s571_s3, [#allocation5]  }
 0x12b   :  { %495 = dma.done.wait [#allocation5], 128  }
 0x12c   :  { %496 = vsyncadd [#allocation5], 4294967168 }
 0x12d   :  { %379 = vsyncpa [#allocation4], 1 }
 0x12e   :  { %380 = vsyncpa [#allocation7], 1 }
 0x12f   :  { %381 = vsyncpa [#allocation5], 1 }

</bundles_post_ra>
